<compile_context>
chip_gen: v5e
topology: v5e:2x2
jax: 0.10.0
libtpu: 0.0.40
codegen_flags: <defaults>
</compile_context>

<pallas_src>
import numpy as np
import jax
import jax.numpy as jnp
from jax.experimental import pallas as pl
from jax.experimental.pallas import tpu as pltpu

# Fixed module parameters (deterministic, from the PyTorch module's __init__).
RGB_FROM_HED = np.array(
    [[0.65, 0.70, 0.29],
     [0.07, 0.99, 0.11],
     [0.27, 0.57, 0.78]], dtype=np.float32)
EPS = 1e-6
NEG_LOG_E = float(-np.log(EPS))                     # == -log(e) in the torch code
# Fold the "-(img * e)" scale/negate into the mixing matrix: coefficients for
# output channel c are  -e * rgb_from_hed[k, c].
M_SCALED = (-NEG_LOG_E) * RGB_FROM_HED              # (3, 3) constants

LANE = 128


def _vmem_limit_bytes():
    """Per-generation scoped-VMEM budget (conservative fallback for v7x/unknown)."""
    try:
        kind = jax.devices()[0].device_kind.lower()
    except Exception:
        kind = ""
    if ("v5" in kind) or ("v6" in kind):
        return 64 * 1024 * 1024        # 128 MiB physical VMEM -> generous scoped limit
    return 40 * 1024 * 1024            # v7x has only 64 MiB physical per TensorCore


_VMEM_LIMIT = _vmem_limit_bytes()


def _max_block_pixels(vmem_bytes_per_pixel):
    # 4 live buffers per block (input + output, each double-buffered); keep
    # ~25% of the scoped limit as headroom for compiler-internal scratch.
    return max(LANE, (_VMEM_LIMIT * 3 // 4) // (4 * vmem_bytes_per_pixel))


def _pick_tb(B, pixels_per_batch_row, nt, max_pixels):
    """Widen the block over batch without collapsing the grid below 2 steps."""
    max_tb = max(1, max_pixels // max(pixels_per_batch_row, 1))
    min_steps = min(2, B * nt)          # can't ask for 2 steps if only 1 exists
    for cand in range(min(B, max_tb), 0, -1):
        if B % cand == 0 and (B // cand) * nt >= min_steps:
            return cand
    return 1


def _mix_channel(x0, x1, x2, c):
    acc = (x0 * float(M_SCALED[0, c])
           + x1 * float(M_SCALED[1, c])
           + x2 * float(M_SCALED[2, c]))
    # clamp(exp(acc), 0, 1) == exp(min(acc, 0)): exp >= 0 and monotone.
    return jnp.exp(jnp.minimum(acc, 0.0))


def _hed2rgb_kernel_4d(x_ref, o_ref):
    # x_ref / o_ref: (tb, 3, tr, 128) float32 blocks; each channel slab is a
    # contiguous stack of full (8,128) tiles -> unmasked loads/stores.
    x0 = x_ref[:, 0, :, :]
    x1 = x_ref[:, 1, :, :]
    x2 = x_ref[:, 2, :, :]
    for c in range(3):
        o_ref[:, c, :, :] = _mix_channel(x0, x1, x2, c)


def _hed2rgb_kernel_3d(x_ref, o_ref):
    # x_ref / o_ref: (tb, 3, tn) float32 blocks (ragged / non-128-aligned path).
    x0 = x_ref[:, 0, :]
    x1 = x_ref[:, 1, :]
    x2 = x_ref[:, 2, :]
    for c in range(3):
        o_ref[:, c, :] = _mix_channel(x0, x1, x2, c)


def hed2rgb(img):
    """img: (B, 3, H, W) or (3, H, W) HED image -> RGB image, same shape."""
    squeeze = (img.ndim == 3)
    if squeeze:
        img = img[None]
    B, C, H, W = img.shape
    assert C == 3, "Hed2Rgb expects 3 channels (H, E, D)"
    N = H * W
    orig_dtype = img.dtype
    x = img.reshape(B, C, N).astype(jnp.float32)

    cost = pl.CostEstimate(
        flops=6 * B * 3 * N,            # 3 mul + 2 add + 1 min per output element
        transcendentals=B * 3 * N,      # one exp per output element
        bytes_accessed=2 * B * 3 * N * 4)

    if N % LANE == 0:
        # Fast path: free view to (B, 3, n_rows, 128).
        n_rows = N // LANE
        x4 = x.reshape(B, C, n_rows, LANE)
        max_pixels = _max_block_pixels(12)           # 3 channels * 4 B, no sublane pad
        max_rows = max(1, max_pixels // LANE)
        if n_rows <= max_rows:
            tr, nt = n_rows, 1                        # full extent (allowed even if %8 != 0)
        else:
            tr = max(8, (max_rows // 8) * 8)          # multiple of 8; ragged last block masked
            nt = -(-n_rows // tr)
        tb = _pick_tb(B, tr * LANE, nt, max_pixels)
        out = pl.pallas_call(
            _hed2rgb_kernel_4d,
            out_shape=jax.ShapeDtypeStruct((B, C, n_rows, LANE), jnp.float32),
            grid_spec=pltpu.PrefetchScalarGridSpec(
                num_scalar_prefetch=0,
                grid=(B // tb, nt),
                in_specs=[pl.BlockSpec((tb, C, tr, LANE), lambda b, t: (b, 0, t, 0))],
                out_specs=pl.BlockSpec((tb, C, tr, LANE), lambda b, t: (b, 0, t, 0)),
            ),
            compiler_params=pltpu.CompilerParams(
                dimension_semantics=("parallel", "parallel"),
                vmem_limit_bytes=_VMEM_LIMIT),
            cost_estimate=cost,
        )(x4)
    else:
        # Ragged path: no host-side pad/slice; Pallas masks the partial last
        # spatial block (OOB lanes never reach HBM).  Channel axis sits on
        # sublanes here (3 -> 8 pad), so the per-pixel VMEM cost is 32 B.
        max_pixels = _max_block_pixels(32)
        if N <= LANE:
            tn, nt = N, 1                             # block == full dim (allowed)
        else:
            tn_cap = max(LANE, (max_pixels // LANE) * LANE)
            tn = min((N // LANE) * LANE, tn_cap)      # multiple of 128
            nt = -(-N // tn)
        tb = _pick_tb(B, tn, nt, max_pixels)
        out = pl.pallas_call(
            _hed2rgb_kernel_3d,
            out_shape=jax.ShapeDtypeStruct((B, C, N), jnp.float32),
            grid_spec=pltpu.PrefetchScalarGridSpec(
                num_scalar_prefetch=0,
                grid=(B // tb, nt),
                in_specs=[pl.BlockSpec((tb, C, tn), lambda b, t: (b, 0, t))],
                out_specs=pl.BlockSpec((tb, C, tn), lambda b, t: (b, 0, t)),
            ),
            compiler_params=pltpu.CompilerParams(
                dimension_semantics=("parallel", "parallel"),
                vmem_limit_bytes=_VMEM_LIMIT),
            cost_estimate=cost,
        )(x)

    out = out.reshape(B, C, H, W).astype(orig_dtype)
    return out[0] if squeeze else out


def _reference(img):
    # Plain-JAX reference mirroring torch_hed2rgb exactly.
    e = -jnp.log(jnp.float32(EPS))
    x = jnp.moveaxis(img, -3, -1)                                   # (..., H, W, 3)
    y = jnp.exp(jnp.matmul(-(x * e), jnp.asarray(RGB_FROM_HED),
                           precision=jax.lax.Precision.HIGHEST))
    y = jnp.clip(y, 0.0, 1.0)
    return jnp.moveaxis(y, -1, -3)                                  # (..., 3, H, W)


if __name__ == "__main__":
    key = jax.random.PRNGKey(0)
    k0, k1 = jax.random.split(key)

    # Aligned fast path: H*W = 256 (multiple of 128).
    img = jax.random.uniform(k0, (2, 3, 16, 16), dtype=jnp.float32)
    out = jax.block_until_ready(hed2rgb(img))
    np.testing.assert_allclose(np.asarray(out), np.asarray(_reference(img)),
                               rtol=5e-5, atol=1e-5)

    # Ragged fallback path: H*W = 180 (not a multiple of 128).
    img2 = jax.random.uniform(k1, (2, 3, 9, 20), dtype=jnp.float32)
    out2 = jax.block_until_ready(hed2rgb(img2))
    np.testing.assert_allclose(np.asarray(out2), np.asarray(_reference(img2)),
                               rtol=5e-5, atol=1e-5)

    print("KERNEL_OK")
</pallas_src>

<mosaic_0001>
module attributes {stable_mosaic.version = 11 : i64} {
  func.func @_hed2rgb_kernel_4d(%arg0: i32, %arg1: i32, %arg2: memref<1x3x2x128xf32, #tpu.memory_space<vmem>>, %arg3: memref<1x3x2x128xf32, #tpu.memory_space<vmem>>) attributes {dimension_semantics = [#tpu.dimension_semantics<parallel>, #tpu.dimension_semantics<parallel>], iteration_bounds = array<i64: 2, 1>, scalar_prefetch = 0 : i64, scratch_operands = 0 : i64, tpu.core_type = #tpu.core_type<tc>, window_params = [{transform_indices = @transform_0, window_bounds = array<i64: 1, 3, 2, 128>}, {transform_indices = @transform_1, window_bounds = array<i64: 1, 3, 2, 128>}]} {
    %c0 = arith.constant 0 : index
    %c0_0 = arith.constant 0 : index
    %c0_1 = arith.constant 0 : index
    %c0_2 = arith.constant 0 : index
    %0 = vector.load %arg2[%c0, %c0_0, %c0_1, %c0_2] : memref<1x3x2x128xf32, #tpu.memory_space<vmem>>, vector<1x1x2x128xf32>
    %1 = vector.shape_cast %0 : vector<1x1x2x128xf32> to vector<1x2x128xf32>
    %c0_3 = arith.constant 0 : index
    %c1 = arith.constant 1 : index
    %c0_4 = arith.constant 0 : index
    %c0_5 = arith.constant 0 : index
    %2 = vector.load %arg2[%c0_3, %c1, %c0_4, %c0_5] : memref<1x3x2x128xf32, #tpu.memory_space<vmem>>, vector<1x1x2x128xf32>
    %3 = vector.shape_cast %2 : vector<1x1x2x128xf32> to vector<1x2x128xf32>
    %c0_6 = arith.constant 0 : index
    %c2 = arith.constant 2 : index
    %c0_7 = arith.constant 0 : index
    %c0_8 = arith.constant 0 : index
    %4 = vector.load %arg2[%c0_6, %c2, %c0_7, %c0_8] : memref<1x3x2x128xf32, #tpu.memory_space<vmem>>, vector<1x1x2x128xf32>
    %5 = vector.shape_cast %4 : vector<1x1x2x128xf32> to vector<1x2x128xf32>
    %cst = arith.constant -8.98008155 : f32
    %6 = vector.broadcast %cst : f32 to vector<1x2x128xf32>
    %7 = arith.mulf %1, %6 : vector<1x2x128xf32>
    %cst_9 = arith.constant -0.967085778 : f32
    %8 = vector.broadcast %cst_9 : f32 to vector<1x2x128xf32>
    %9 = arith.mulf %3, %8 : vector<1x2x128xf32>
    %10 = arith.addf %7, %9 : vector<1x2x128xf32>
    %cst_10 = arith.constant -3.73018813 : f32
    %11 = vector.broadcast %cst_10 : f32 to vector<1x2x128xf32>
    %12 = arith.mulf %5, %11 : vector<1x2x128xf32>
    %13 = arith.addf %10, %12 : vector<1x2x128xf32>
    %cst_11 = arith.constant 0.000000e+00 : f32
    %14 = vector.broadcast %cst_11 : f32 to vector<1x2x128xf32>
    %15 = arith.minimumf %13, %14 : vector<1x2x128xf32>
    %16 = math.exp %15 : vector<1x2x128xf32>
    %c0_12 = arith.constant 0 : index
    %c0_13 = arith.constant 0 : index
    %c0_14 = arith.constant 0 : index
    %c0_15 = arith.constant 0 : index
    %17 = vector.load %arg3[%c0_12, %c0_13, %c0_14, %c0_15] : memref<1x3x2x128xf32, #tpu.memory_space<vmem>>, vector<1x1x2x128xf32>
    %18 = vector.shape_cast %17 : vector<1x1x2x128xf32> to vector<1x2x128xf32>
    %19 = vector.shape_cast %16 : vector<1x2x128xf32> to vector<1x1x2x128xf32>
    tpu.vector_store %arg3[%c0_12, %c0_13, %c0_14, %c0_15], %19 {strides = array<i32>} : memref<1x3x2x128xf32, #tpu.memory_space<vmem>>, vector<1x1x2x128xf32>,
    %cst_16 = arith.constant -9.67085742 : f32
    %20 = vector.broadcast %cst_16 : f32 to vector<1x2x128xf32>
    %21 = arith.mulf %1, %20 : vector<1x2x128xf32>
    %cst_17 = arith.constant -13.6773558 : f32
    %22 = vector.broadcast %cst_17 : f32 to vector<1x2x128xf32>
    %23 = arith.mulf %3, %22 : vector<1x2x128xf32>
    %24 = arith.addf %21, %23 : vector<1x2x128xf32>
    %cst_18 = arith.constant -7.87484121 : f32
    %25 = vector.broadcast %cst_18 : f32 to vector<1x2x128xf32>
    %26 = arith.mulf %5, %25 : vector<1x2x128xf32>
    %27 = arith.addf %24, %26 : vector<1x2x128xf32>
    %cst_19 = arith.constant 0.000000e+00 : f32
    %28 = vector.broadcast %cst_19 : f32 to vector<1x2x128xf32>
    %29 = arith.minimumf %27, %28 : vector<1x2x128xf32>
    %30 = math.exp %29 : vector<1x2x128xf32>
    %c0_20 = arith.constant 0 : index
    %c1_21 = arith.constant 1 : index
    %c0_22 = arith.constant 0 : index
    %c0_23 = arith.constant 0 : index
    %31 = vector.load %arg3[%c0_20, %c1_21, %c0_22, %c0_23] : memref<1x3x2x128xf32, #tpu.memory_space<vmem>>, vector<1x1x2x128xf32>
    %32 = vector.shape_cast %31 : vector<1x1x2x128xf32> to vector<1x2x128xf32>
    %33 = vector.shape_cast %30 : vector<1x2x128xf32> to vector<1x1x2x128xf32>
    tpu.vector_store %arg3[%c0_20, %c1_21, %c0_22, %c0_23], %33 {strides = array<i32>} : memref<1x3x2x128xf32, #tpu.memory_space<vmem>>, vector<1x1x2x128xf32>,
    %cst_24 = arith.constant -4.00649786 : f32
    %34 = vector.broadcast %cst_24 : f32 to vector<1x2x128xf32>
    %35 = arith.mulf %1, %34 : vector<1x2x128xf32>
    %cst_25 = arith.constant -1.51970613 : f32
    %36 = vector.broadcast %cst_25 : f32 to vector<1x2x128xf32>
    %37 = arith.mulf %3, %36 : vector<1x2x128xf32>
    %38 = arith.addf %35, %37 : vector<1x2x128xf32>
    %cst_26 = arith.constant -10.7760983 : f32
    %39 = vector.broadcast %cst_26 : f32 to vector<1x2x128xf32>
    %40 = arith.mulf %5, %39 : vector<1x2x128xf32>
    %41 = arith.addf %38, %40 : vector<1x2x128xf32>
    %cst_27 = arith.constant 0.000000e+00 : f32
    %42 = vector.broadcast %cst_27 : f32 to vector<1x2x128xf32>
    %43 = arith.minimumf %41, %42 : vector<1x2x128xf32>
    %44 = math.exp %43 : vector<1x2x128xf32>
    %c0_28 = arith.constant 0 : index
    %c2_29 = arith.constant 2 : index
    %c0_30 = arith.constant 0 : index
    %c0_31 = arith.constant 0 : index
    %45 = vector.load %arg3[%c0_28, %c2_29, %c0_30, %c0_31] : memref<1x3x2x128xf32, #tpu.memory_space<vmem>>, vector<1x1x2x128xf32>
    %46 = vector.shape_cast %45 : vector<1x1x2x128xf32> to vector<1x2x128xf32>
    %47 = vector.shape_cast %44 : vector<1x2x128xf32> to vector<1x1x2x128xf32>
    tpu.vector_store %arg3[%c0_28, %c2_29, %c0_30, %c0_31], %47 {strides = array<i32>} : memref<1x3x2x128xf32, #tpu.memory_space<vmem>>, vector<1x1x2x128xf32>,
    return
  }
  func.func @transform_0(%arg0: i32, %arg1: i32) -> (i32, i32, i32, i32) {
    %c0_i32 = arith.constant 0 : i32
    %c0_i32_0 = arith.constant 0 : i32
    %c0_i32_1 = arith.constant 0 : i32
    return %arg0, %c0_i32, %arg1, %c0_i32_0 : i32, i32, i32, i32
  }
  func.func @transform_1(%arg0: i32, %arg1: i32) -> (i32, i32, i32, i32) {
    %c0_i32 = arith.constant 0 : i32
    %c0_i32_0 = arith.constant 0 : i32
    %c0_i32_1 = arith.constant 0 : i32
    return %arg0, %c0_i32, %arg1, %c0_i32_0 : i32, i32, i32, i32
  }
}

</mosaic_0001>

<bundles_post_ra>
// kernel: tpu_custom_call.1
= control target key start
LH: loop header
LB: loop body
LE: loop exit
PB: predicated region body
PF: predicated region fallthrough
CT: control target
= control target key end

     0   :  { %6 = vsyncpa [#allocation3], 0  ;;  %s631_s0 = inlined_call_operand.hbm [shape: f32[2,3,2,128], index: 0, kind: input, shape index: {}]   ;;  %s632_s1 = inlined_call_operand.hbm [shape: f32[2,3,2,128], index: 1, kind: output, shape index: {}]  }
   0x1   :  { %8 = vsyncpa [#allocation3 + $0x1], 0 }
   0x2   :  { %9 = vsyncpa [#allocation4], 0 }
   0x3   :  { %11 = vsyncpa [#allocation4 + $0x1], 0  ;;  %s507_s6 = smov 0   ;;  %s509_s7 = smov 0  }
   0x4   :  { %s511_s8 = smov 0   ;;  %s513_s9 = smov 0  }
   0x5   :  { %s515_s10 = smov 0   ;;  %s517_s11 = smov 0  }
   0x6 LB: > { %s290_s12 = sadd.s32 4294967295, %s491_s11   ;;  %s291_s13 = sadd.s32 4294967294, %s491_s11   ;;  %s491_s11 = sphi %s517_s11, %s17_s11   ;;  %s487_s10 = sphi %s515_s10, %s641_s10   ;;  %s483_s9 = sphi %s513_s9, %s640_s9   ;;  %s479_s8 = sphi %s511_s8, %s639_s8   ;;  %s475_s7 = sphi %s509_s7, %s638_s7   ;;  %s471_s6 = sphi %s507_s6, %s637_s6  }
   0x7   : > { %s29_s14 = sadd.s32 1, %s487_s10  ;;  %s38_s15 = sadd.s32 1, %s479_s8 }
   0x8   : > { %p31_p0 = scmp.ge.s32.totalorder %s29_s14, 2  ;;  %p45_p1 = scmp.ne.s32.totalorder %s479_s8, %s475_s7 }
   0x9   : > { %p46_p2 = scmp.eq.s32.totalorder %s491_s11, 0  ;;  %p51_p3 = scmp.ne.s32.totalorder %s475_s7, %s471_s6 }
   0xa   : > { %s643_s14 = smov (%p31_p0, %s29_s14), 0  ;;  %p52_p5 = scmp.eq.s32.totalorder %s290_s12, 0 }
   0xb   : > { %p548_p4 = por %p46_p2, %p45_p1  ;;  %s33_s17 = ssub.s32 %s487_s10, %s643_s14 }
   0xc   : > { %p77_p6 = scmp.eq.s32.totalorder %s290_s12, 1  ;;  %p36_p7 = scmp.eq.s32.totalorder %s33_s17, 0 }
   0xd   : > { %p554_p8 = por %p52_p5, %p51_p3  ;;  %p83_p10 = scmp.eq.s32.totalorder %s291_s13, 1 }
   0xe   : > { %p558_p9 = por %p77_p6, %p45_p1  ;;  %p293_p12 = scmp.ge.s32.totalorder %s491_s11, 2 }
   0xf   : > { %s563_s20 = scalar_select %p36_p7, %s479_s8, %s38_s15  }
  0x10   : > { %p565_p11 = por %p83_p10, %p51_p3  ;;  %p319_p13 = scmp.lt.s32.totalorder %s491_s11, 2 }
  0x11   : > { %s103_s22 = sand.u32 1, %s479_s8   ;;  %s304_s24 = smul.u32 6, %s487_s10 }
  0x12   : > { %s303_s23 = smul.u32 6, %s103_s22  ;;  %p312_p0 = pnand %p319_p13, %p548_p4 }
  0x13   : > { %s113_s27 = scalar_lea.hbm %s631_s0, %s304_s24  ;;  %p295_p1 = scmp.ge.s32.totalorder %s491_s11, 1 }
  0x14   : > { %s107_s28 = scalar_lea.vmem [#allocation2], %s303_s23  ;;  %s114_s30 = sshll.u32 %s113_s27, 4  ;;  %s115_s30 = int_to_ptr.hbm [resolvable:$true] %s114_s30 }
  0x15   : > { %s116_s29 = sshll.u32 %s107_s28, 4  ;;  %s104_s2 = scalar_lea.sflag [#allocation3], %s103_s22  ;;  %s117_s29 = int_to_ptr.vmem [resolvable:$true] %s116_s29 }
  0x16   : > { %s493_s3 = smov 32   ;;  %s494_s4 = smov 2  }
  0x17   : > { %314 = dma.hbm_to_vmem [thread:$0]  (!%p312_p0), %s115_s30, 96, %s117_s29, %s104_s2, %s493_s3, %s493_s3, %s494_s4  }
  0x18   : > { %p124_p2 = scmp.lt.s32.totalorder %s491_s11, 3 }
  0x1a   : > { %p125_p3 = pnand %p295_p1, %p124_p2 }
  0x1b   : > { %s581_s5 = sand.u32 (!%p125_p3), 1, %s475_s7  }
  0x1c   : > { %128 = sbr.rel (%p125_p3) target bundleno = 58 (0x3a), region = 24  ;;  %s131_s13 = scalar_lea.sflag (!%p125_p3), [#allocation3], %s581_s5 }
  0x1d   : > { %s305_s12 = smul.u32 (!%p125_p3), 6, %s581_s5 }
  0x1f   : > { %s134_s15 = scalar_lea.vmem (!%p125_p3), [#allocation2], %s305_s12 }
  0x21   : > { %462 = dma.done.wait (%p554_p8), %s131_s13, 96  }
  0x22   : > { %464 = vsyncadd (%p554_p8), %s131_s13, 4294967200  ;;  %v154_v0 = vld [vmem:[%s134_s15] sm:$0x3]  ;;  %v296_v1 = vld [vmem:[%s134_s15 + $0x2] sm:$0x3]  ;;  %s306_s16 = smul.u32 6, %s483_s9 }
  0x23   : > { %v297_v2 = vld [vmem:[%s134_s15 + $0x4] sm:$0x3]  ;;  %v159_v3 = vmul.f32 -8.980082, %v154_v0  ;;  %v160_v4 = vmul.f32 -0.9670858, %v296_v1 }
  0x24   : > { %v162_v5 = vmul.f32 -3.7301881, %v297_v2  ;;  %v168_v6 = vmul.f32 -9.670857, %v154_v0  ;;  %v169_v7 = vmul.f32 -13.677356, %v296_v1  ;;  %s201_s22 = scalar_lea.hbm %s632_s1, %s306_s16 }
  0x25   : > { %v171_v8 = vmul.f32 -7.874841, %v297_v2  ;;  %v161_v9 = vadd.f32 %v160_v4, %v159_v3  ;;  %v178_v10 = vmul.f32 -4.006498, %v154_v0  ;;  %v179_v11 = vmul.f32 -1.5197061, %v296_v1 }
  0x26   : > { %v181_v12 = vmul.f32 -10.776098, %v297_v2  ;;  %v170_v13 = vadd.f32 %v169_v7, %v168_v6  ;;  %s153_s23 = scalar_lea.vmem [#allocation5], %s305_s12  ;;  %s204_s25 = sshll.u32 %s201_s22, 4  ;;  %s205_s25 = int_to_ptr.hbm [resolvable:$true] %s204_s25 }
  0x27   : > { %v163_v14 = vadd.f32 %v162_v5, %v161_v9  ;;  %v180_v15 = vadd.f32 %v179_v11, %v178_v10  ;;  %s202_s24 = sshll.u32 %s153_s23, 4  ;;  %s189_s9 = scalar_lea.sflag [#allocation4], %s581_s5  ;;  %s203_s24 = int_to_ptr.vmem [resolvable:$true] %s202_s24 }
  0x28   : > { %v172_v16 = vadd.f32 %v171_v8, %v170_v13  ;;  %s423_s26 = sshra.s32 %s205_s25, 4  ;;  %s429_s30 = scalar_lea.hbm %s632_s1, 12  ;;  %s424_s26 = int_to_ptr.hbm [resolvable:$true] %s423_s26 }
  0x29   : > { %v164_v17 = vmin.f32 %v163_v14, 0.0  ;;  %v182_v18 = vadd.f32 %v181_v12, %v180_v15  ;;  %s425_s27 = scalar_lea.hbm %s424_s26, 6  ;;  %p430_p7 = scmp.lt.s32.totalorder %s424_s26, %s632_s1 }
  0x2a   : > { %v173_v19 = vmin.f32 %v172_v16, 0.0  ;;  %p426_p4 = scmp.ne.s32.totalorder %s424_s26, %s425_s27  ;;  %p431_p8 = scmp.lt.s32.totalorder %s429_s30, %s425_s27 }
  0x2b   : > { %v165_v20 = vmul.f32 1.442695, %v164_v17  ;;  %v183_v21 = vmin.f32 %v182_v18, 0.0 }
  0x2c   : > { %v174_v22 = vmul.f32 1.442695, %v173_v19  ;;  %p427_p5 = pnand %p426_p4, %p558_p9  ;;  %p432_p10 = por %p431_p8, %p430_p7 }
  0x2d   : > { %373 = vpow2.f32 %v165_v20  ;;  %v184_v23 = vmul.f32 1.442695, %v183_v21 }
  0x2e   : > { %375 = vpow2.f32 %v174_v22  ;;  %p428_p6 = pneg %p427_p5 }
  0x2f   : > { %377 = vpow2.f32 %v184_v23 }
  0x30   : > { %p433_p13 = pnand %p432_p10, %p428_p6 }
  0x33   : > { %v374_v24 = vpop.eup %373 }
  0x34   : > { %v376_v25 = vpop.eup %375  ;;  %167 = vst [vmem:[%s153_s23] sm:$0x3] %v374_v24 }
  0x35   : > { %v378_v26 = vpop.eup %377  ;;  %298 = vst [vmem:[%s153_s23 + $0x2] sm:$0x3] %v376_v25 }
  0x36   : > { %299 = vst [vmem:[%s153_s23 + $0x4] sm:$0x3] %v378_v26 }
  0x37   : > { %436 = shalt.err (!%p433_p13)
}
  0x38   : > { %s495_s4 = smov 32   ;;  %s496_s5 = smov 2  }
  0x39   : > { %309 = dma.vmem_to_hbm [thread:$0]  (%p558_p9), %s203_s24, 96, %s205_s25, %s189_s9, %s495_s4, %s495_s4, %s496_s5  }
  0x3a PF: > { %s219_s12 = sand.u32 1, %s471_s6   ;;  %p316_p0 = pnand %p293_p12, %p565_p11 }
  0x3b   : > { %s220_s13 = scalar_lea.sflag [#allocation4], %s219_s12 }
  0x3c   : > { %p317_p1 = pneg %p316_p0 }
  0x3e   : > { %466 = dma.done.wait (%p317_p1), %s220_s13, 96  }
  0x3f   : > { %468 = vsyncadd (%p317_p1), %s220_s13, 4294967200  ;;  %s17_s11 = sadd.s32 1, %s491_s11   ;;  %s637_s6 = smov %s475_s7 }
  0x40   : > { %p14_p2 = scmp.ge.s32.totalorder %s17_s11, 4   ;;  %s638_s7 = smov %s479_s8 }
  0x41   : > { %s639_s8 = smov %s563_s20  ;;  %s640_s9 = smov %s487_s10 }
  0x42   : > { %s641_s10 = smov %s643_s14  ;;  %16 = sbr.rel (!%p14_p2) target bundleno = 6 (0x6), region = 73 }
  0x47   :  { %226 = vsyncpa [#allocation3], 1 }
  0x48   :  { %228 = vsyncpa [#allocation3 + $0x1], 1 }
  0x49   :  { %229 = vsyncpa [#allocation4], 1 }
  0x4a   :  { %231 = vsyncpa [#allocation4 + $0x1], 1 }

</bundles_post_ra>
